<compile_context>
chip_gen: v7x
topology: tpu7x:2x2x1
jax: 0.10.0
libtpu: 0.0.40
codegen_flags: <defaults>
</compile_context>

<pallas_src>
import math
import numpy as np
import jax
import jax.numpy as jnp
from jax import lax
from jax.experimental import pallas as pl
from jax.experimental.pallas import tpu as pltpu

# ---------------- model config (small, consistent with the module) ----------------
B = 2           # batch
C = 8           # context_size / sequence length
D = 32          # d_model
N_HEAD = 4
HEAD = D // N_HEAD
BC = B * C      # flattened tokens per call
NHBC = N_HEAD * BC   # head-stacked rows (sublane-major)
EPS = 1e-5      # nn.LayerNorm default
SEG = 128       # lane-aligned segment stride inside the weight slab


def _layer_norm(x, gamma, beta):
    # x: (BC, D), gamma/beta: (1, D)
    mu = jnp.mean(x, axis=-1, keepdims=True)
    var = jnp.mean((x - mu) * (x - mu), axis=-1, keepdims=True)
    xhat = (x - mu) * lax.rsqrt(var + EPS)
    return xhat * gamma + beta


def _gelu(x):
    # exact tanh-approx GELU from the PyTorch GELU module
    c = math.sqrt(2.0 / math.pi)
    cdf = 0.5 * (1.0 + jnp.tanh(c * (x + 0.044715 * x * x * x)))
    return x * cdf


def transformer_block_kernel(
    x_ref,       # (BC, D)        flattened tokens
    mask_ref,    # (NHBC, NHBC)   additive bias: 0 valid, -1e30 masked (head/batch/causal)
    wslab_ref,   # (D, 3*SEG)     [wqkv(scaled Q) | pad | wo | pad | w1], 128-lane aligned
    w2_ref,      # (4D, D)
    vec_ref,     # (8, 128)       one bias / LN vector per sublane row
    out_ref,     # (BC, D)
):
    x = x_ref[...]
    wslab = wslab_ref[...]
    vec = vec_ref[...]

    # 128-lane-aligned slab segments (each slice starts on a lane-tile boundary)
    wqkv = wslab[:, 0:3 * D]                 # (D, 3D)   starts at lane 0
    wo = wslab[:, SEG:SEG + D]               # (D, D)    starts at lane 128
    w1 = wslab[:, 2 * SEG:2 * SEG + 4 * D]   # (D, 4D)   starts at lane 256

    # one parameter per sublane row -> free sublane slices
    ln1_g = vec[0:1, 0:D]
    ln1_b = vec[1:2, 0:D]
    ln2_g = vec[2:3, 0:D]
    ln2_b = vec[3:4, 0:D]
    bo = vec[4:5, 0:D]
    b2 = vec[5:6, 0:D]
    bqkv = vec[6:7, 0:3 * D]
    b1 = vec[7:8, 0:4 * D]

    # ---- LayerNorm 1 ----
    xn1 = _layer_norm(x, ln1_g, ln1_b)

    # ---- fused QKV projection over all B*C tokens at once (Q pre-scaled at pack time) ----
    qkv = jnp.dot(xn1, wqkv, preferred_element_type=jnp.float32) + bqkv   # (BC, 3D)

    # Heads stacked along SUBLANES: (N_HEAD*BC, HEAD) = (64, 8).
    def split_heads(base):
        return jnp.concatenate(
            [qkv[:, base + h * HEAD: base + (h + 1) * HEAD] for h in range(N_HEAD)],
            axis=0)

    Qs = split_heads(0)          # (NHBC, HEAD)
    Ks = split_heads(D)
    Vs = split_heads(2 * D)

    # ---- ONE logits matmul for all heads/batches; block-diag structure via additive mask ----
    s = jnp.einsum("qd,kd->qk", Qs, Ks,
                   preferred_element_type=jnp.float32)                   # (NHBC, NHBC)
    s = s + mask_ref[...]        # 0 where (same head & same batch & causal), else -1e30

    # 64-lane-wide softmax rows (diagonal always valid -> finite row max, no NaNs)
    m = jnp.max(s, axis=-1, keepdims=True)
    e = jnp.exp(s - m)
    inv = pl.reciprocal(jnp.sum(e, axis=-1, keepdims=True))              # exact, EUP slot
    p = e * inv

    # ---- ONE PV matmul for all heads/batches ----
    ctx = jnp.dot(p, Vs, preferred_element_type=jnp.float32)             # (NHBC, HEAD)

    # ---- output projection: per-head accumulation against sublane blocks (no lane concat) ----
    acc = jnp.dot(ctx[0:BC, :], wo[0:HEAD, :], preferred_element_type=jnp.float32)
    for h in range(1, N_HEAD):
        acc = acc + jnp.dot(ctx[h * BC:(h + 1) * BC, :],
                            wo[h * HEAD:(h + 1) * HEAD, :],
                            preferred_element_type=jnp.float32)
    attn = acc + bo
    # att_dropout / residual_dropout: identity (eval mode)

    # residual uses the post-LN1 activation (matches the PyTorch forward exactly)
    x2 = xn1 + attn

    # ---- LayerNorm 2 + MLP: linear1 -> GELU -> residual_proj (+ dropout identity) ----
    xn2 = _layer_norm(x2, ln2_g, ln2_b)
    h1 = _gelu(jnp.dot(xn2, w1, preferred_element_type=jnp.float32) + b1)
    mlp = jnp.dot(h1, w2_ref[...], preferred_element_type=jnp.float32) + b2

    out_ref[...] = xn2 + mlp


def _build_mask_bias():
    """Additive bias (0 valid / -1e30 masked) over head-stacked flattened tokens."""
    idx = np.arange(NHBC)
    i, j = idx[:, None], idx[None, :]
    same_head = (i // BC) == (j // BC)
    ti, tj = i % BC, j % BC
    same_batch = (ti // C) == (tj // C)
    causal = ti >= tj
    valid = same_head & same_batch & causal
    return jnp.asarray(np.where(valid, 0.0, -1e30).astype(np.float32))


def transformer_block(x, params):
    """x: (B, C, D) float32. params: dict of weights stored in (in, out) layout."""
    scale = 1.0 / math.sqrt(HEAD)

    # Fold the attention scale into the Q columns of the QKV projection (weights + bias).
    wqkv_s = jnp.concatenate([params["wqkv"][:, :D] * scale, params["wqkv"][:, D:]], axis=1)
    bqkv_s = jnp.concatenate([params["bqkv"][:, :D] * scale, params["bqkv"][:, D:]], axis=1)

    # 128-lane-aligned weight slab: [wqkv | pad | wo | pad | w1]  -> (D, 3*128)
    w_slab = jnp.zeros((D, 3 * SEG), jnp.float32)
    w_slab = w_slab.at[:, 0:3 * D].set(wqkv_s)
    w_slab = w_slab.at[:, SEG:SEG + D].set(params["wo"])
    w_slab = w_slab.at[:, 2 * SEG:2 * SEG + 4 * D].set(params["w1"])

    # Bias / LN slab: one parameter per sublane row of an (8, 128) tile.
    vec_slab = jnp.zeros((8, 128), jnp.float32)
    vec_slab = vec_slab.at[0, 0:D].set(params["ln1_g"][0])
    vec_slab = vec_slab.at[1, 0:D].set(params["ln1_b"][0])
    vec_slab = vec_slab.at[2, 0:D].set(params["ln2_g"][0])
    vec_slab = vec_slab.at[3, 0:D].set(params["ln2_b"][0])
    vec_slab = vec_slab.at[4, 0:D].set(params["bo"][0])
    vec_slab = vec_slab.at[5, 0:D].set(params["b2"][0])
    vec_slab = vec_slab.at[6, 0:3 * D].set(bqkv_s[0])
    vec_slab = vec_slab.at[7, 0:4 * D].set(params["b1"][0])

    mask_bias = _build_mask_bias()           # (NHBC, NHBC), trace-time constant
    x2d = x.reshape(BC, D)                   # flatten batch*seq outside the kernel

    out2d = pl.pallas_call(
        transformer_block_kernel,
        out_shape=jax.ShapeDtypeStruct((BC, D), jnp.float32),
        grid_spec=pltpu.PrefetchScalarGridSpec(
            num_scalar_prefetch=0,
            grid=(1,),   # single step: launch/DMA-bound at this size on every generation
            in_specs=[
                pl.BlockSpec((BC, D), lambda i: (0, 0)),           # x (flattened)
                pl.BlockSpec((NHBC, NHBC), lambda i: (0, 0)),      # additive mask bias
                pl.BlockSpec((D, 3 * SEG), lambda i: (0, 0)),      # aligned weight slab
                pl.BlockSpec((4 * D, D), lambda i: (0, 0)),        # w2
                pl.BlockSpec((8, 128), lambda i: (0, 0)),          # bias / LN slab
            ],
            out_specs=pl.BlockSpec((BC, D), lambda i: (0, 0)),
        ),
        compiler_params=pltpu.CompilerParams(dimension_semantics=("arbitrary",)),
    )(x2d, mask_bias, w_slab, params["w2"], vec_slab)
    return out2d.reshape(B, C, D)


# ---------------- pure-JAX reference (mirrors the PyTorch forward) ----------------
def reference(x, p):
    def ln(x, g, b):
        mu = jnp.mean(x, axis=-1, keepdims=True)
        var = jnp.mean((x - mu) ** 2, axis=-1, keepdims=True)
        return (x - mu) / jnp.sqrt(var + EPS) * g + b

    x = ln(x, p["ln1_g"], p["ln1_b"])
    qkv = x @ p["wqkv"] + p["bqkv"]
    Q, K, V = jnp.split(qkv, 3, axis=-1)
    Q = Q.reshape(B, C, N_HEAD, HEAD).transpose(0, 2, 1, 3)
    K = K.reshape(B, C, N_HEAD, HEAD).transpose(0, 2, 1, 3)
    V = V.reshape(B, C, N_HEAD, HEAD).transpose(0, 2, 1, 3)
    att = jnp.einsum("bhqd,bhkd->bhqk", Q, K) / math.sqrt(HEAD)
    mask = jnp.tril(jnp.ones((C, C), dtype=bool))
    att = jnp.where(mask[None, None], att, -jnp.inf)
    att = jax.nn.softmax(att, axis=-1)
    out = jnp.einsum("bhqk,bhkd->bhqd", att, V).transpose(0, 2, 1, 3).reshape(B, C, D)
    out = out @ p["wo"] + p["bo"]
    x = x + out
    x = ln(x, p["ln2_g"], p["ln2_b"])
    h = x @ p["w1"] + p["b1"]
    c = math.sqrt(2.0 / math.pi)
    h = h * 0.5 * (1.0 + jnp.tanh(c * (h + 0.044715 * h ** 3)))
    return x + (h @ p["w2"] + p["b2"])


if __name__ == "__main__":
    key = jax.random.PRNGKey(0)
    ks = jax.random.split(key, 16)

    def init(k, shape, fan_in):
        bound = 1.0 / math.sqrt(fan_in)
        return jax.random.uniform(k, shape, jnp.float32, -bound, bound)

    # Linear weights stored as (in, out) so the kernel does x @ W + b
    params = {
        "ln1_g": jax.random.normal(ks[0], (1, D), jnp.float32) * 0.1 + 1.0,
        "ln1_b": jax.random.normal(ks[1], (1, D), jnp.float32) * 0.1,
        "wqkv": init(ks[2], (D, 3 * D), D),
        "bqkv": init(ks[3], (1, 3 * D), D),
        "wo":   init(ks[4], (D, D), D),
        "bo":   init(ks[5], (1, D), D),
        "ln2_g": jax.random.normal(ks[6], (1, D), jnp.float32) * 0.1 + 1.0,
        "ln2_b": jax.random.normal(ks[7], (1, D), jnp.float32) * 0.1,
        "w1":   init(ks[8], (D, 4 * D), D),
        "b1":   init(ks[9], (1, 4 * D), D),
        "w2":   init(ks[10], (4 * D, D), 4 * D),
        "b2":   init(ks[11], (1, D), 4 * D),
    }

    x = jax.random.normal(ks[12], (B, C, D), jnp.float32)

    out = transformer_block(x, params)
    jax.block_until_ready(out)

    ref = reference(x, params)
    assert out.shape == (B, C, D)
    assert jnp.allclose(out, ref, atol=1e-3, rtol=1e-3), "mismatch vs JAX reference"
    print("KERNEL_OK")
</pallas_src>

<mosaic_0001>
module attributes {stable_mosaic.version = 11 : i64} {
  func.func @transformer_block_kernel(%arg0: i32, %arg1: memref<16x32xf32, #tpu.memory_space<vmem>>, %arg2: memref<64x64xf32, #tpu.memory_space<vmem>>, %arg3: memref<32x384xf32, #tpu.memory_space<vmem>>, %arg4: memref<128x32xf32, #tpu.memory_space<vmem>>, %arg5: memref<8x128xf32, #tpu.memory_space<vmem>>, %arg6: memref<16x32xf32, #tpu.memory_space<vmem>>) attributes {dimension_semantics = [#tpu.dimension_semantics<arbitrary>], iteration_bounds = array<i64: 1>, scalar_prefetch = 0 : i64, scratch_operands = 0 : i64, tpu.core_type = #tpu.core_type<tc>, window_params = [{pipeline_mode = #tpu.pipeline_mode<synchronous>, transform_indices = @transform_0, window_bounds = array<i64: 16, 32>}, {pipeline_mode = #tpu.pipeline_mode<synchronous>, transform_indices = @transform_1, window_bounds = array<i64: 64, 64>}, {pipeline_mode = #tpu.pipeline_mode<synchronous>, transform_indices = @transform_2, window_bounds = array<i64: 32, 384>}, {pipeline_mode = #tpu.pipeline_mode<synchronous>, transform_indices = @transform_3, window_bounds = array<i64: 128, 32>}, {pipeline_mode = #tpu.pipeline_mode<synchronous>, transform_indices = @transform_4, window_bounds = array<i64: 8, 128>}, {pipeline_mode = #tpu.pipeline_mode<synchronous>, transform_indices = @transform_5, window_bounds = array<i64: 16, 32>}]} {
    %c0 = arith.constant 0 : index
    %c0_0 = arith.constant 0 : index
    %0 = vector.load %arg1[%c0, %c0_0] : memref<16x32xf32, #tpu.memory_space<vmem>>, vector<16x32xf32>
    %c0_1 = arith.constant 0 : index
    %c0_2 = arith.constant 0 : index
    %1 = vector.load %arg3[%c0_1, %c0_2] : memref<32x384xf32, #tpu.memory_space<vmem>>, vector<32x384xf32>
    %c0_3 = arith.constant 0 : index
    %c0_4 = arith.constant 0 : index
    %2 = vector.load %arg5[%c0_3, %c0_4] : memref<8x128xf32, #tpu.memory_space<vmem>>, vector<8x128xf32>
    %3 = vector.extract_strided_slice %1 {offsets = [0, 0], sizes = [32, 96], strides = [1, 1]} : vector<32x384xf32> to vector<32x96xf32>
    %4 = vector.extract_strided_slice %1 {offsets = [0, 128], sizes = [32, 32], strides = [1, 1]} : vector<32x384xf32> to vector<32x32xf32>
    %5 = vector.extract_strided_slice %1 {offsets = [0, 256], sizes = [32, 128], strides = [1, 1]} : vector<32x384xf32> to vector<32x128xf32>
    %6 = vector.extract_strided_slice %2 {offsets = [0, 0], sizes = [1, 32], strides = [1, 1]} : vector<8x128xf32> to vector<1x32xf32>
    %7 = vector.extract_strided_slice %2 {offsets = [1, 0], sizes = [1, 32], strides = [1, 1]} : vector<8x128xf32> to vector<1x32xf32>
    %8 = vector.extract_strided_slice %2 {offsets = [2, 0], sizes = [1, 32], strides = [1, 1]} : vector<8x128xf32> to vector<1x32xf32>
    %9 = vector.extract_strided_slice %2 {offsets = [3, 0], sizes = [1, 32], strides = [1, 1]} : vector<8x128xf32> to vector<1x32xf32>
    %10 = vector.extract_strided_slice %2 {offsets = [4, 0], sizes = [1, 32], strides = [1, 1]} : vector<8x128xf32> to vector<1x32xf32>
    %11 = vector.extract_strided_slice %2 {offsets = [5, 0], sizes = [1, 32], strides = [1, 1]} : vector<8x128xf32> to vector<1x32xf32>
    %12 = vector.extract_strided_slice %2 {offsets = [6, 0], sizes = [1, 96], strides = [1, 1]} : vector<8x128xf32> to vector<1x96xf32>
    %13 = vector.extract_strided_slice %2 {offsets = [7, 0], sizes = [1, 128], strides = [1, 1]} : vector<8x128xf32> to vector<1x128xf32>
    %cst = arith.constant dense<0.000000e+00> : vector<16xf32>
    %14 = vector.multi_reduction <add>, %0, %cst [1] : vector<16x32xf32> to vector<16xf32>
    %15 = vector.shape_cast %14 : vector<16xf32> to vector<16x1xf32>
    %cst_5 = arith.constant 3.200000e+01 : f32
    %16 = vector.broadcast %cst_5 : f32 to vector<16x1xf32>
    %17 = arith.divf %15, %16 : vector<16x1xf32>
    %18 = vector.broadcast %17 : vector<16x1xf32> to vector<16x32xf32>
    %19 = arith.subf %0, %18 : vector<16x32xf32>
    %20 = vector.broadcast %17 : vector<16x1xf32> to vector<16x32xf32>
    %21 = arith.subf %0, %20 : vector<16x32xf32>
    %22 = arith.mulf %19, %21 : vector<16x32xf32>
    %cst_6 = arith.constant dense<0.000000e+00> : vector<16xf32>
    %23 = vector.multi_reduction <add>, %22, %cst_6 [1] : vector<16x32xf32> to vector<16xf32>
    %24 = vector.shape_cast %23 : vector<16xf32> to vector<16x1xf32>
    %cst_7 = arith.constant 3.200000e+01 : f32
    %25 = vector.broadcast %cst_7 : f32 to vector<16x1xf32>
    %26 = arith.divf %24, %25 : vector<16x1xf32>
    %27 = vector.broadcast %17 : vector<16x1xf32> to vector<16x32xf32>
    %28 = arith.subf %0, %27 : vector<16x32xf32>
    %cst_8 = arith.constant 9.99999974E-6 : f32
    %29 = vector.broadcast %cst_8 : f32 to vector<16x1xf32>
    %30 = arith.addf %26, %29 : vector<16x1xf32>
    %31 = math.rsqrt %30 : vector<16x1xf32>
    %32 = vector.broadcast %31 : vector<16x1xf32> to vector<16x32xf32>
    %33 = arith.mulf %28, %32 : vector<16x32xf32>
    %34 = vector.broadcast %6 : vector<1x32xf32> to vector<16x32xf32>
    %35 = arith.mulf %33, %34 : vector<16x32xf32>
    %36 = vector.broadcast %7 : vector<1x32xf32> to vector<16x32xf32>
    %37 = arith.addf %35, %36 : vector<16x32xf32>
    %cst_9 = arith.constant dense<0.000000e+00> : vector<16x96xf32>
    %38 = tpu.matmul %37, %3, %cst_9 {dimension_numbers = #tpu.dot_dimension_numbers<[1], [0], [0], [1], [0, 0, 1, 1], [], []>} : vector<16x32xf32>, vector<32x96xf32>, vector<16x96xf32> -> vector<16x96xf32>
    %39 = vector.broadcast %12 : vector<1x96xf32> to vector<16x96xf32>
    %40 = arith.addf %38, %39 : vector<16x96xf32>
    %41 = vector.extract_strided_slice %40 {offsets = [0, 0], sizes = [16, 8], strides = [1, 1]} : vector<16x96xf32> to vector<16x8xf32>
    %42 = vector.extract_strided_slice %40 {offsets = [0, 8], sizes = [16, 8], strides = [1, 1]} : vector<16x96xf32> to vector<16x8xf32>
    %43 = vector.extract_strided_slice %40 {offsets = [0, 16], sizes = [16, 8], strides = [1, 1]} : vector<16x96xf32> to vector<16x8xf32>
    %44 = vector.extract_strided_slice %40 {offsets = [0, 24], sizes = [16, 8], strides = [1, 1]} : vector<16x96xf32> to vector<16x8xf32>
    %45 = tpu.concatenate %41, %42, %43, %44 in 0 : vector<16x8xf32>, vector<16x8xf32>, vector<16x8xf32>, vector<16x8xf32> -> vector<64x8xf32>
    %46 = vector.extract_strided_slice %40 {offsets = [0, 32], sizes = [16, 8], strides = [1, 1]} : vector<16x96xf32> to vector<16x8xf32>
    %47 = vector.extract_strided_slice %40 {offsets = [0, 40], sizes = [16, 8], strides = [1, 1]} : vector<16x96xf32> to vector<16x8xf32>
    %48 = vector.extract_strided_slice %40 {offsets = [0, 48], sizes = [16, 8], strides = [1, 1]} : vector<16x96xf32> to vector<16x8xf32>
    %49 = vector.extract_strided_slice %40 {offsets = [0, 56], sizes = [16, 8], strides = [1, 1]} : vector<16x96xf32> to vector<16x8xf32>
    %50 = tpu.concatenate %46, %47, %48, %49 in 0 : vector<16x8xf32>, vector<16x8xf32>, vector<16x8xf32>, vector<16x8xf32> -> vector<64x8xf32>
    %51 = vector.extract_strided_slice %40 {offsets = [0, 64], sizes = [16, 8], strides = [1, 1]} : vector<16x96xf32> to vector<16x8xf32>
    %52 = vector.extract_strided_slice %40 {offsets = [0, 72], sizes = [16, 8], strides = [1, 1]} : vector<16x96xf32> to vector<16x8xf32>
    %53 = vector.extract_strided_slice %40 {offsets = [0, 80], sizes = [16, 8], strides = [1, 1]} : vector<16x96xf32> to vector<16x8xf32>
    %54 = vector.extract_strided_slice %40 {offsets = [0, 88], sizes = [16, 8], strides = [1, 1]} : vector<16x96xf32> to vector<16x8xf32>
    %55 = tpu.concatenate %51, %52, %53, %54 in 0 : vector<16x8xf32>, vector<16x8xf32>, vector<16x8xf32>, vector<16x8xf32> -> vector<64x8xf32>
    "tpu.trace_start"() <{level = 10 : i32, message = "qd,kd->qk"}> : () -> ()
    %cst_10 = arith.constant dense<0.000000e+00> : vector<64x64xf32>
    %56 = tpu.matmul %45, %50, %cst_10 {dimension_numbers = #tpu.dot_dimension_numbers<[1], [1], [0], [0], [0, 0, 1, 0], [], []>} : vector<64x8xf32>, vector<64x8xf32>, vector<64x64xf32> -> vector<64x64xf32>
    "tpu.trace_stop"() : () -> ()
    %c0_11 = arith.constant 0 : index
    %c0_12 = arith.constant 0 : index
    %57 = vector.load %arg2[%c0_11, %c0_12] : memref<64x64xf32, #tpu.memory_space<vmem>>, vector<64x64xf32>
    %58 = arith.addf %56, %57 : vector<64x64xf32>
    %cst_13 = arith.constant dense<0xFF800000> : vector<64xf32>
    %59 = vector.multi_reduction <maximumf>, %58, %cst_13 [1] : vector<64x64xf32> to vector<64xf32>
    %60 = vector.shape_cast %59 : vector<64xf32> to vector<64x1xf32>
    %61 = vector.broadcast %60 : vector<64x1xf32> to vector<64x64xf32>
    %62 = arith.subf %58, %61 : vector<64x64xf32>
    %63 = math.exp %62 : vector<64x64xf32>
    %cst_14 = arith.constant dense<0.000000e+00> : vector<64xf32>
    %64 = vector.multi_reduction <add>, %63, %cst_14 [1] : vector<64x64xf32> to vector<64xf32>
    %65 = vector.shape_cast %64 : vector<64xf32> to vector<64x1xf32>
    %66 = tpu.reciprocal %65 : vector<64x1xf32> -> vector<64x1xf32>
    %67 = vector.broadcast %66 : vector<64x1xf32> to vector<64x64xf32>
    %68 = arith.mulf %63, %67 : vector<64x64xf32>
    %cst_15 = arith.constant dense<0.000000e+00> : vector<64x8xf32>
    %69 = tpu.matmul %68, %55, %cst_15 {dimension_numbers = #tpu.dot_dimension_numbers<[1], [0], [0], [1], [0, 0, 1, 1], [], []>} : vector<64x64xf32>, vector<64x8xf32>, vector<64x8xf32> -> vector<64x8xf32>
    %70 = vector.extract_strided_slice %69 {offsets = [0, 0], sizes = [16, 8], strides = [1, 1]} : vector<64x8xf32> to vector<16x8xf32>
    %71 = vector.extract_strided_slice %4 {offsets = [0, 0], sizes = [8, 32], strides = [1, 1]} : vector<32x32xf32> to vector<8x32xf32>
    %cst_16 = arith.constant dense<0.000000e+00> : vector<16x32xf32>
    %72 = tpu.matmul %70, %71, %cst_16 {dimension_numbers = #tpu.dot_dimension_numbers<[1], [0], [0], [1], [0, 0, 1, 1], [], []>} : vector<16x8xf32>, vector<8x32xf32>, vector<16x32xf32> -> vector<16x32xf32>
    %73 = vector.extract_strided_slice %69 {offsets = [16, 0], sizes = [16, 8], strides = [1, 1]} : vector<64x8xf32> to vector<16x8xf32>
    %74 = vector.extract_strided_slice %4 {offsets = [8, 0], sizes = [8, 32], strides = [1, 1]} : vector<32x32xf32> to vector<8x32xf32>
    %cst_17 = arith.constant dense<0.000000e+00> : vector<16x32xf32>
    %75 = tpu.matmul %73, %74, %cst_17 {dimension_numbers = #tpu.dot_dimension_numbers<[1], [0], [0], [1], [0, 0, 1, 1], [], []>} : vector<16x8xf32>, vector<8x32xf32>, vector<16x32xf32> -> vector<16x32xf32>
    %76 = arith.addf %72, %75 : vector<16x32xf32>
    %77 = vector.extract_strided_slice %69 {offsets = [32, 0], sizes = [16, 8], strides = [1, 1]} : vector<64x8xf32> to vector<16x8xf32>
    %78 = vector.extract_strided_slice %4 {offsets = [16, 0], sizes = [8, 32], strides = [1, 1]} : vector<32x32xf32> to vector<8x32xf32>
    %cst_18 = arith.constant dense<0.000000e+00> : vector<16x32xf32>
    %79 = tpu.matmul %77, %78, %cst_18 {dimension_numbers = #tpu.dot_dimension_numbers<[1], [0], [0], [1], [0, 0, 1, 1], [], []>} : vector<16x8xf32>, vector<8x32xf32>, vector<16x32xf32> -> vector<16x32xf32>
    %80 = arith.addf %76, %79 : vector<16x32xf32>
    %81 = vector.extract_strided_slice %69 {offsets = [48, 0], sizes = [16, 8], strides = [1, 1]} : vector<64x8xf32> to vector<16x8xf32>
    %82 = vector.extract_strided_slice %4 {offsets = [24, 0], sizes = [8, 32], strides = [1, 1]} : vector<32x32xf32> to vector<8x32xf32>
    %cst_19 = arith.constant dense<0.000000e+00> : vector<16x32xf32>
    %83 = tpu.matmul %81, %82, %cst_19 {dimension_numbers = #tpu.dot_dimension_numbers<[1], [0], [0], [1], [0, 0, 1, 1], [], []>} : vector<16x8xf32>, vector<8x32xf32>, vector<16x32xf32> -> vector<16x32xf32>
    %84 = arith.addf %80, %83 : vector<16x32xf32>
    %85 = vector.broadcast %10 : vector<1x32xf32> to vector<16x32xf32>
    %86 = arith.addf %84, %85 : vector<16x32xf32>
    %87 = arith.addf %37, %86 : vector<16x32xf32>
    %cst_20 = arith.constant dense<0.000000e+00> : vector<16xf32>
    %88 = vector.multi_reduction <add>, %87, %cst_20 [1] : vector<16x32xf32> to vector<16xf32>
    %89 = vector.shape_cast %88 : vector<16xf32> to vector<16x1xf32>
    %cst_21 = arith.constant 3.200000e+01 : f32
    %90 = vector.broadcast %cst_21 : f32 to vector<16x1xf32>
    %91 = arith.divf %89, %90 : vector<16x1xf32>
    %92 = vector.broadcast %91 : vector<16x1xf32> to vector<16x32xf32>
    %93 = arith.subf %87, %92 : vector<16x32xf32>
    %94 = vector.broadcast %91 : vector<16x1xf32> to vector<16x32xf32>
    %95 = arith.subf %87, %94 : vector<16x32xf32>
    %96 = arith.mulf %93, %95 : vector<16x32xf32>
    %cst_22 = arith.constant dense<0.000000e+00> : vector<16xf32>
    %97 = vector.multi_reduction <add>, %96, %cst_22 [1] : vector<16x32xf32> to vector<16xf32>
    %98 = vector.shape_cast %97 : vector<16xf32> to vector<16x1xf32>
    %cst_23 = arith.constant 3.200000e+01 : f32
    %99 = vector.broadcast %cst_23 : f32 to vector<16x1xf32>
    %100 = arith.divf %98, %99 : vector<16x1xf32>
    %101 = vector.broadcast %91 : vector<16x1xf32> to vector<16x32xf32>
    %102 = arith.subf %87, %101 : vector<16x32xf32>
    %cst_24 = arith.constant 9.99999974E-6 : f32
    %103 = vector.broadcast %cst_24 : f32 to vector<16x1xf32>
    %104 = arith.addf %100, %103 : vector<16x1xf32>
    %105 = math.rsqrt %104 : vector<16x1xf32>
    %106 = vector.broadcast %105 : vector<16x1xf32> to vector<16x32xf32>
    %107 = arith.mulf %102, %106 : vector<16x32xf32>
    %108 = vector.broadcast %8 : vector<1x32xf32> to vector<16x32xf32>
    %109 = arith.mulf %107, %108 : vector<16x32xf32>
    %110 = vector.broadcast %9 : vector<1x32xf32> to vector<16x32xf32>
    %111 = arith.addf %109, %110 : vector<16x32xf32>
    %cst_25 = arith.constant dense<0.000000e+00> : vector<16x128xf32>
    %112 = tpu.matmul %111, %5, %cst_25 {dimension_numbers = #tpu.dot_dimension_numbers<[1], [0], [0], [1], [0, 0, 1, 1], [], []>} : vector<16x32xf32>, vector<32x128xf32>, vector<16x128xf32> -> vector<16x128xf32>
    %113 = vector.broadcast %13 : vector<1x128xf32> to vector<16x128xf32>
    %114 = arith.addf %112, %113 : vector<16x128xf32>
    %cst_26 = arith.constant 4.471500e-02 : f32
    %115 = vector.broadcast %cst_26 : f32 to vector<16x128xf32>
    %116 = arith.mulf %115, %114 : vector<16x128xf32>
    %117 = arith.mulf %116, %114 : vector<16x128xf32>
    %118 = arith.mulf %117, %114 : vector<16x128xf32>
    %119 = arith.addf %114, %118 : vector<16x128xf32>
    %cst_27 = arith.constant 0.797884583 : f32
    %120 = vector.broadcast %cst_27 : f32 to vector<16x128xf32>
    %121 = arith.mulf %120, %119 : vector<16x128xf32>
    %122 = math.tanh %121 : vector<16x128xf32>
    %cst_28 = arith.constant 1.000000e+00 : f32
    %123 = vector.broadcast %cst_28 : f32 to vector<16x128xf32>
    %124 = arith.addf %123, %122 : vector<16x128xf32>
    %cst_29 = arith.constant 5.000000e-01 : f32
    %125 = vector.broadcast %cst_29 : f32 to vector<16x128xf32>
    %126 = arith.mulf %125, %124 : vector<16x128xf32>
    %127 = arith.mulf %114, %126 : vector<16x128xf32>
    %c0_30 = arith.constant 0 : index
    %c0_31 = arith.constant 0 : index
    %128 = vector.load %arg4[%c0_30, %c0_31] : memref<128x32xf32, #tpu.memory_space<vmem>>, vector<128x32xf32>
    %cst_32 = arith.constant dense<0.000000e+00> : vector<16x32xf32>
    %129 = tpu.matmul %127, %128, %cst_32 {dimension_numbers = #tpu.dot_dimension_numbers<[1], [0], [0], [1], [0, 0, 1, 1], [], []>} : vector<16x128xf32>, vector<128x32xf32>, vector<16x32xf32> -> vector<16x32xf32>
    %130 = vector.broadcast %11 : vector<1x32xf32> to vector<16x32xf32>
    %131 = arith.addf %129, %130 : vector<16x32xf32>
    %132 = arith.addf %111, %131 : vector<16x32xf32>
    %c0_33 = arith.constant 0 : index
    %c0_34 = arith.constant 0 : index
    %133 = vector.load %arg6[%c0_33, %c0_34] : memref<16x32xf32, #tpu.memory_space<vmem>>, vector<16x32xf32>
    tpu.vector_store %arg6[%c0_33, %c0_34], %132 {strides = array<i32>} : memref<16x32xf32, #tpu.memory_space<vmem>>, vector<16x32xf32>,
    return
  }
  func.func @transform_0(%arg0: i32) -> (i32, i32) {
    %c0_i32 = arith.constant 0 : i32
    %c0_i32_0 = arith.constant 0 : i32
    %c0_i32_1 = arith.constant 0 : i32
    return %c0_i32, %c0_i32_0 : i32, i32
  }
  func.func @transform_1(%arg0: i32) -> (i32, i32) {
    %c0_i32 = arith.constant 0 : i32
    %c0_i32_0 = arith.constant 0 : i32
    %c0_i32_1 = arith.constant 0 : i32
    return %c0_i32, %c0_i32_0 : i32, i32
  }
  func.func @transform_2(%arg0: i32) -> (i32, i32) {
    %c0_i32 = arith.constant 0 : i32
    %c0_i32_0 = arith.constant 0 : i32
    %c0_i32_1 = arith.constant 0 : i32
    return %c0_i32, %c0_i32_0 : i32, i32
  }
  func.func @transform_3(%arg0: i32) -> (i32, i32) {
    %c0_i32 = arith.constant 0 : i32
    %c0_i32_0 = arith.constant 0 : i32
    %c0_i32_1 = arith.constant 0 : i32
    return %c0_i32, %c0_i32_0 : i32, i32
  }
  func.func @transform_4(%arg0: i32) -> (i32, i32) {
    %c0_i32 = arith.constant 0 : i32
    %c0_i32_0 = arith.constant 0 : i32
    %c0_i32_1 = arith.constant 0 : i32
    return %c0_i32, %c0_i32_0 : i32, i32
  }
  func.func @transform_5(%arg0: i32) -> (i32, i32) {
    %c0_i32 = arith.constant 0 : i32
    %c0_i32_0 = arith.constant 0 : i32
    %c0_i32_1 = arith.constant 0 : i32
    return %c0_i32, %c0_i32_0 : i32, i32
  }
}

</mosaic_0001>

<bundles_post_ra>
// kernel: tpu_custom_call.1
= control target key start
LH: loop header
LB: loop body
LE: loop exit
PB: predicated region body
PF: predicated region fallthrough
CT: control target
= control target key end

     0   :  { %10 = vsyncpa [#allocation3], 0  ;;  %s2000_s0 = inlined_call_operand.hbm [shape: f32[16,32], index: 0, kind: input, shape index: {}]   ;;  %s2001_s1 = inlined_call_operand.vmem [shape: f32[64,64], index: 1, kind: input, shape index: {}]   ;;  %s2002_s2 = inlined_call_operand.vmem [shape: f32[32,384], index: 2, kind: input, shape index: {}]   ;;  %s2003_s3 = inlined_call_operand.vmem [shape: f32[128,32], index: 3, kind: input, shape index: {}]   ;;  %s2004_s4 = inlined_call_operand.vmem [shape: f32[8,128], index: 4, kind: input, shape index: {}]   ;;  %s2005_s5 = inlined_call_operand.hbm [shape: f32[16,32], index: 5, kind: output, shape index: {}]  }
   0x1   :  { %11 = vsyncpa [#allocation4], 0  ;;  %s1664_s18 = smov [#allocation2]   ;;  %s1616_s22 = scalar_lea.hbm %s2000_s0, 256 }
   0x2   :  { %s17_s19 = sshll.u32 %s1664_s18, 4  ;;  %p1617_p0 = scmp.ne.s32.totalorder %s2000_s0, %s1616_s22  ;;  %s18_s19 = int_to_ptr.vmem [resolvable:$true] %s17_s19 }
   0x3   :  { %p1620_p1 = scmp.lt.u32.totalorder %s1616_s22, %s2000_s0 }
   0x5   :  { %p1622_p2 = pnand %p1620_p1, %p1617_p0 }
   0x7   :  { %1625 = shalt.err (!%p1622_p2)
}
   0x8   :  { %s1626_s27 = scalar_lea.vmem %s18_s19, 256  ;;  %p1631_p4 = scmp.lt.s32.totalorder %s18_s19, %s18_s19 }
   0x9   :  { %p1627_p3 = scmp.ne.s32.totalorder %s18_s19, %s1626_s27  ;;  %p1632_p5 = scmp.lt.s32.totalorder %s1626_s27, %s1626_s27 }
   0xb   :  { %p1633_p6 = por %p1632_p5, %p1631_p4 }
   0xd   :  { %p1634_p7 = pnand %p1633_p6, %p1627_p3 }
   0xf   :  { %1637 = shalt.err (!%p1634_p7)
}
  0x10   :  { %s1665_s28 = smov 128   ;;  %s1666_s29 = smov 8  }
  0x11   :  { %23 = dma.hbm_to_vmem [thread:$0]  %s2000_s0, 256, %s18_s19, [#allocation3], %s1665_s28, %s1665_s28, %s1666_s29  }
  0x12   :  { %1660 = dma.done.wait [#allocation3], 256  }
  0x13   :  { %1661 = vsyncadd [#allocation3], 4294967040  ;;  %vm50_vm0 = vcmask 261120   ;;  %v35_v0 = vld [vmem:[#allocation2] sm:$0xff]  ;;  %v36_v1 = vld [vmem:[#allocation2 + $0x8] sm:$0xff]  ;;  %v78_v22 = vlaneseq  ;;  %vm213_vm1 = vcmask 64512  }
  0x14   :  { %v51_v2 = vsel %vm50_vm0, %v35_v0, 0.0  ;;  %v54_v3 = vsel %vm50_vm0, %v36_v1, 0.0  ;;  %v37_v14 = vld [vmem:[%s2002_s2] sm:$0xff]  ;;  %v40_v15 = vld [vmem:[%s2002_s2 + $0x18] sm:$0xff]  ;;  %v43_v16 = vld [vmem:[%s2002_s2 + $0x30] sm:$0xff]  ;;  %s1668_s16 = smov 112  }
  0x15   :  { %52 = vadd.xlane.f32.xlu0 %v51_v2  ;;  %v1429_v17 = vpack.c.bf16 %v40_v15, %v37_v14  ;;  %v46_v18 = vld [vmem:[%s2002_s2 + $0x48] sm:$0xff]  ;;  %v1734_v26 = vshrl.u32 %v78_v22, 7  ;;  %v1740_v29 = vld [vmem:[%s2004_s4] sm:$0xff]  ;;  %s1667_s4 = smov 120   ;;  %s1669_s17 = smov 104   ;;  %vm1767_vm2 = vmpackc.low %vm213_vm1, %vm213_vm1  ;;  %vm351_vm3 = vcmask 523264  }
  0x16   :  { %v1433_v19 = vpack.c.bf16 %v46_v18, %v43_v16  ;;  %s1670_s18 = smov 96   ;;  %s1671_s11 = smov 64  }
  0x17   :  { %1430 = vmatprep.subr.bf16.mxu0 %v1429_v17  ;;  %v80_v28 = vsub.s32 0, %v1734_v26  ;;  %v86_v30 = vsub.s32 1, %v1734_v26  ;;  %v92_v41 = vsub.s32 6, %v1734_v26 }
  0x18   :  { %1432 = vmatpush3.bf16.msra.mxu0 %v1429_v17  ;;  %v191_v17 = vld [vmem:[%s2001_s1 + $0x10] sm:$0xff] }
  0x19   :  { %55 = vadd.xlane.f32.xlu0 %v54_v3  ;;  %1434 = vmatprep.subr.bf16.mxu0 %v1433_v19  ;;  %v81_v31 = vrot.slane %v1740_v29, %v80_v28  ;;  %v87_v34 = vrot.slane %v1740_v29, %v86_v30  ;;  %v93_v42 = vrot.slane %v1740_v29, %v92_v41  ;;  %v195_v41 = vld [vmem:[%s2001_s1 + $0x30] sm:$0xff] }
  0x1c   :  { %1436 = vmatpush3.bf16.msra.mxu0 %v1433_v19 }
  0xa2   :  { %v53_v4 = vpop.xlane.xlu0 %52 }
  0xa3   :  { %v58_v5 = vmul.f32 0.03125, %v53_v4 }
  0xa5   :  { %v60_v6 = vsub.f32 %v35_v0, %v58_v5 }
  0xa6   :  { %v56_v7 = vpop.xlane.xlu0 %55 }
  0xa7   :  { %v59_v8 = vmul.f32 0.03125, %v56_v7  ;;  %v62_v9 = vmul.f32 %v60_v6, %v60_v6 }
  0xa9   :  { %v61_v10 = vsub.f32 %v36_v1, %v59_v8  ;;  %v64_v11 = vsel %vm50_vm0, %v62_v9, 0.0 }
  0xaa   :  { %65 = vadd.xlane.f32.xlu1 %v64_v11  ;;  %v189_v11 = vld [vmem:[%s2001_s1] sm:$0xff] }
  0xab   :  { %v63_v12 = vmul.f32 %v61_v10, %v61_v10 }
  0xad   :  { %v67_v13 = vsel %vm50_vm0, %v63_v12, 0.0 }
  0xae   :  { %68 = vadd.xlane.f32.xlu1 %v67_v13 }
 0x137   :  { %v66_v20 = vpop.xlane.xlu1 %65 }
 0x138   :  { %v70_v21 = vmul.f32 0.03125, %v66_v20  ;;  %v192_v20 = vld [vmem:[%s2001_s1 + $0x18] sm:$0xff] }
 0x13a   :  { %v72_v23 = vadd.f32 1e-05, %v70_v21 }
 0x13b   :  { %v69_v24 = vpop.xlane.xlu1 %68 }
 0x13c   :  { %1572 = vrsqrt.f32 %v72_v23  ;;  %v71_v25 = vmul.f32 0.03125, %v69_v24  ;;  %v194_v23 = vld [vmem:[%s2001_s1 + $0x28] sm:$0xff] }
 0x13e   :  { %v73_v27 = vadd.f32 1e-05, %v71_v25 }
 0x140   :  { %1574 = vrsqrt.f32 %v73_v27 }
 0x146   :  { %v1573_v32 = vpop.eup %1572 }
 0x147   :  { %v76_v33 = vmul.f32 %v1573_v32, %v60_v6  ;;  %v196_v32 = vld [vmem:[%s2001_s1 + $0x38] sm:$0xff] }
 0x149   :  { %v82_v35 = vmul.f32 %v81_v31, %v76_v33 }
 0x14a   :  { %v1575_v36 = vpop.eup %1574 }
 0x14b   :  { %v77_v37 = vmul.f32 %v1575_v36, %v61_v10  ;;  %v1745_v38 = vadd.f32 %v87_v34, %v82_v35  ;;  %v190_v10 = vld [vmem:[%s2001_s1 + $0x8] sm:$0xff] }
 0x14d   :  { %v83_v39 = vmul.f32 %v81_v31, %v77_v37  ;;  %1304 = vmatprep.mubr.msk.f32.mxu0 %vm50_vm0, %v1745_v38  ;;  %v193_v31 = vld [vmem:[%s2001_s1 + $0x20] sm:$0xff] }
 0x14f   :  { %v1749_v40 = vadd.f32 %v87_v34, %v83_v39 }
 0x151   :  { %1305 = vmatmul.mubr.msk.f32.vlgmr.msra.gmra.mrb[0].mxu0 %vm50_vm0, %v1749_v40 }
 0x224   :  { %v1306_v43 = vpop.f32.mrb[0].mxu0 }
 0x225   :  { %v172_v44 = vadd.f32 %v1306_v43, %v93_v42  ;;  %v166_v45 = vpop.f32.mrb[1].mxu0 }
 0x226   :  { %v167_v46 = vadd.f32 %v166_v45, %v93_v42 }
 0x227   :  { %179 = vrot.lane.b32.xlu1 %v172_v44, %s1667_s4 }
 0x228   :  { %177 = vrot.lane.b32.xlu0 %v167_v46, %s1667_s4  ;;  %1323 = vmatprep.mubr.msk.f32.mxu1 %vm213_vm1, %v167_v46  ;;  %v1756_v47 = vpack.i.bf16 %v172_v44, %v167_v46 }
 0x22b   :  { %181 = vrot.lane.b32.xlu1 %v167_v46, %s1668_s16 }
 0x22c   :  { %185 = vrot.lane.b32.xlu0 %v167_v46, %s1669_s17 }
 0x22f   :  { %183 = vrot.lane.b32.xlu1 %v172_v44, %s1668_s16 }
 0x230   :  { %1533 = vrot.lane.b32.xlu0 %v1756_v47, %s1670_s18 }
 0x233   :  { %187 = vrot.lane.b32.xlu1 %v172_v44, %s1669_s17 }
 0x299   :  { %v180_v48 = vpop.permute.xlu1 %179 }
 0x29a   :  { %v178_v49 = vpop.permute.xlu0 %177 }
 0x29b   :  { %v1759_v50 = vpack.i.bf16 %v180_v48, %v178_v49 }
 0x29d   :  { %v182_v51 = vpop.permute.xlu1 %181  ;;  %1538 = vrot.lane.b32.xlu1 %v1759_v50, %s1670_s18 }
 0x29e   :  { %v186_v52 = vpop.permute.xlu0 %185 }
 0x2a1   :  { %v184_v53 = vpop.permute.xlu1 %183 }
 0x2a2   :  { %v1762_v54 = vpack.i.bf16 %v184_v53, %v182_v51  ;;  %v1534_v55 = vpop.permute.xlu0 %1533 }
 0x2a3   :  { %v1536_v56 = vunpack.i.h.bf16 %v1534_v55  ;;  %v1535_v57 = vunpack.i.l.bf16 %v1534_v55 }
 0x2a4   :  { %1543 = vrot.lane.b32.xlu0 %v1762_v54, %s1670_s18 }
 0x2a5   :  { %v188_v59 = vpop.permute.xlu1 %187  ;;  %v1437_v60 = vpack.c.bf16 %v1536_v56, %v1535_v57 }
 0x2a6   :  { %v1771_v61 = vpack.i.bf16 %v188_v59, %v186_v52 }
 0x2a7   :  { %1439 = vmatprep.subr.msk.bf16.mxu1 %vm1767_vm2, %v1437_v60 }
 0x2a8   :  { %1548 = vrot.lane.b32.xlu1 %v1771_v61, %s1670_s18  ;;  %1442 = vmatpush3.bf16.xpose.msk.msra.mxu1 %vm1767_vm2, %v1437_v60 }
 0x30f   :  { %v1539_v62 = vpop.permute.xlu1 %1538 }
 0x310   :  { %v1541_v63 = vunpack.i.h.bf16 %v1539_v62  ;;  %v1540_v0 = vunpack.i.l.bf16 %v1539_v62 }
 0x312   :  { %v1443_v1 = vpack.c.bf16 %v1541_v63, %v1540_v0 }
 0x314   :  { %1445 = vmatprep.subr.msk.bf16.mxu1 %vm1767_vm2, %v1443_v1 }
 0x315   :  { %1448 = vmatpush3.bf16.xpose.msk.msra.mxu1 %vm1767_vm2, %v1443_v1 }
 0x316   :  { %v1544_v2 = vpop.permute.xlu0 %1543 }
 0x317   :  { %v1546_v3 = vunpack.i.h.bf16 %v1544_v2  ;;  %v1545_v4 = vunpack.i.l.bf16 %v1544_v2 }
 0x319   :  { %v1449_v5 = vpack.c.bf16 %v1546_v3, %v1545_v4 }
 0x31a   :  { %v1549_v6 = vpop.permute.xlu1 %1548 }
 0x31b   :  { %v1551_v7 = vunpack.i.h.bf16 %v1549_v6  ;;  %v1550_v8 = vunpack.i.l.bf16 %v1549_v6  ;;  %1451 = vmatprep.subr.msk.bf16.mxu1 %vm1767_vm2, %v1449_v5 }
 0x31d   :  { %v1455_v9 = vpack.c.bf16 %v1551_v7, %v1550_v8  ;;  %1454 = vmatpush3.bf16.xpose.msk.msra.mxu1 %vm1767_vm2, %v1449_v5 }
 0x31f   :  { %1457 = vmatprep.subr.msk.bf16.mxu1 %vm1767_vm2, %v1455_v9 }
 0x325   :  { %1460 = vmatpush3.bf16.xpose.msk.msra.mxu1 %vm1767_vm2, %v1455_v9 }
 0x32c   :  { %1324 = vmatmul.mubr.msk.f32.vlgmr.msra.gmra.mrb[0].mxu1 %vm213_vm1, %v172_v44 }
 0x32d   :  { %1326 = vmatprep.mubr.msk.f32.mxu1 %vm213_vm1, %v178_v49 }
 0x330   :  { %1327 = vmatmul.mubr.msk.f32.gmra.mrb[2].mxu1 %vm213_vm1, %v180_v48 }
 0x331   :  { %1329 = vmatprep.mubr.msk.f32.mxu1 %vm213_vm1, %v182_v51 }
 0x334   :  { %1330 = vmatmul.mubr.msk.f32.gmra.mrb[4].mxu1 %vm213_vm1, %v184_v53 }
 0x335   :  { %1332 = vmatprep.mubr.msk.f32.mxu1 %vm213_vm1, %v186_v52 }
 0x338   :  { %1333 = vmatmul.mubr.msk.f32.gmra.mrb[6].mxu1 %vm213_vm1, %v188_v59 }
 0x3ff   :  { %v1325_v12 = vpop.f32.mrb[0].mxu1 }
 0x400   :  { %v318_v13 = vadd.f32 %v1325_v12, %v190_v10  ;;  %v312_v14 = vpop.f32.mrb[1].mxu1 }
 0x401   :  { %v313_v15 = vadd.f32 %v312_v14, %v189_v11 }
 0x402   :  { %v355_v16 = vsel %vm351_vm3, %v318_v13, -inf }
 0x403   :  { %356 = vmax.xlane.f32.xlu1 %v355_v16  ;;  %v1328_v18 = vpop.f32.mrb[2].mxu1  ;;  %v352_v19 = vsel %vm351_vm3, %v313_v15, -inf }
 0x404   :  { %v322_v21 = vpop.f32.mrb[3].mxu1  ;;  %353 = vmax.xlane.f32.xlu0 %v352_v19  ;;  %v328_v24 = vadd.f32 %v1328_v18, %v192_v20 }
 0x405   :  { %v323_v22 = vadd.f32 %v322_v21, %v191_v17 }
 0x406   :  { %v361_v36 = vsel %vm351_vm3, %v328_v24, -inf }
 0x407   :  { %v1331_v25 = vpop.f32.mrb[4].mxu1  ;;  %v358_v27 = vsel %vm351_vm3, %v323_v22, -inf }
 0x408   :  { %v338_v28 = vadd.f32 %v1331_v25, %v194_v23  ;;  %v332_v30 = vpop.f32.mrb[5].mxu1  ;;  %359 = vmax.xlane.f32.xlu0 %v358_v27 }
 0x409   :  { %v1822_v34 = vadd.f32 %v332_v30, %v193_v31 }
 0x40a   :  { %v367_v33 = vsel %vm351_vm3, %v338_v28, -inf }
 0x40b   :  { %368 = vmax.xlane.f32.xlu1 %v367_v33  ;;  %v1334_v35 = vpop.f32.mrb[6].mxu1  ;;  %v364_v44 = vsel %vm351_vm3, %v1822_v34, -inf }
 0x40c   :  { %v1825_v37 = vadd.f32 %v1334_v35, %v196_v32  ;;  %v342_v39 = vpop.f32.mrb[7].mxu1  ;;  %362 = vmax.xlane.f32.xlu0 %v361_v36 }
 0x40d   :  { %v1832_v43 = vadd.f32 %v342_v39, %v195_v41 }
 0x40e   :  { %v373_v42 = vsel %vm351_vm3, %v1825_v37, -inf }
 0x40f   :  { %374 = vmax.xlane.f32.xlu1 %v373_v42  ;;  %v370_v45 = vsel %vm351_vm3, %v1832_v43, -inf }
 0x410   :  { %365 = vmax.xlane.f32.xlu0 %v364_v44 }
 0x414   :  { %371 = vmax.xlane.f32.xlu0 %v370_v45 }
 0x420   :  { %1558 = vrot.lane.b32.xlu1 %v1759_v50, %s1671_s11 }
 0x42a   :  { %1553 = vrot.lane.b32.xlu0 %v1756_v47, %s1671_s11 }
 0x490   :  { %v357_v46 = vpop.xlane.xlu1 %356 }
 0x491   :  { %v377_v48 = vsub.f32 %v318_v13, %v357_v46  ;;  %v354_v49 = vpop.xlane.xlu0 %353 }
 0x492   :  { %v376_v51 = vsub.f32 %v313_v15, %v354_v49 }
 0x493   :  { %v386_v52 = vmul.f32 1.442695, %v377_v48 }
 0x494   :  { %v384_v53 = vmul.f32 1.442695, %v376_v51 }
 0x495   :  { %1576 = vpow2.f32 %v386_v52  ;;  %v360_v55 = vpop.xlane.xlu0 %359 }
 0x496   :  { %1578 = vpow2.f32 %v384_v53  ;;  %v378_v56 = vsub.f32 %v323_v22, %v360_v55 }
 0x498   :  { %v388_v57 = vmul.f32 1.442695, %v378_v56  ;;  %v369_v58 = vpop.xlane.xlu1 %368 }
 0x499   :  { %v381_v59 = vsub.f32 %v338_v28, %v369_v58  ;;  %v363_v60 = vpop.xlane.xlu0 %362 }
 0x49a   :  { %1580 = vpow2.f32 %v388_v57  ;;  %v379_v62 = vsub.f32 %v328_v24, %v363_v60 }
 0x49b   :  { %v394_v50 = vmul.f32 1.442695, %v381_v59 }
 0x49c   :  { %v390_v63 = vmul.f32 1.442695, %v379_v62  ;;  %v375_v0 = vpop.xlane.xlu1 %374 }
 0x49d   :  { %1582 = vpow2.f32 %v394_v50  ;;  %v366_v47 = vpop.xlane.xlu0 %365  ;;  %v383_v23 = vsub.f32 %v1825_v37, %v375_v0 }
 0x49e   :  { %1584 = vpow2.f32 %v390_v63  ;;  %v380_v20 = vsub.f32 %v1822_v34, %v366_v47 }
 0x49f   :  { %v1842_v1 = vpop.eup %1576  ;;  %v398_v25 = vmul.f32 1.442695, %v383_v23 }
 0x4a0   :  { %v1579_v2 = vpop.eup %1578  ;;  %v403_v3 = vsel %vm351_vm3, %v1842_v1, 0.0  ;;  %v1559_v7 = vpop.permute.xlu1 %1558  ;;  %v392_v21 = vmul.f32 1.442695, %v380_v20 }
 0x4a1   :  { %404 = vadd.xlane.f32.xlu1 %v403_v3  ;;  %v372_v4 = vpop.xlane.xlu0 %371  ;;  %v400_v5 = vsel %vm351_vm3, %v1579_v2, 0.0  ;;  %v1561_v13 = vunpack.i.h.bf16 %v1559_v7  ;;  %v1560_v14 = vunpack.i.l.bf16 %v1559_v7 }
 0x4a2   :  { %401 = vadd.xlane.f32.xlu0 %v400_v5  ;;  %v382_v22 = vsub.f32 %v1832_v43, %v372_v4  ;;  %1586 = vpow2.f32 %v392_v21  ;;  %v41_v4 = vld [vmem:[%s2002_s2 + $0x20] sm:$0xff]  ;;  %v38_v5 = vld [vmem:[%s2002_s2 + $0x8] sm:$0xff] }
 0x4a3   :  { %v1465_v19 = vpack.c.bf16 %v1561_v13, %v1560_v14 }
 0x4a4   :  { %v1847_v6 = vpop.eup %1580  ;;  %v396_v24 = vmul.f32 1.442695, %v382_v22 }
 0x4a5   :  { %v1554_v8 = vpop.permute.xlu0 %1553  ;;  %v406_v9 = vsel %vm351_vm3, %v1847_v6, 0.0 }
 0x4a6   :  { %v1556_v10 = vunpack.i.h.bf16 %v1554_v8  ;;  %v1555_v11 = vunpack.i.l.bf16 %v1554_v8  ;;  %407 = vadd.xlane.f32.xlu0 %v406_v9  ;;  %1588 = vpow2.f32 %v396_v24 }
 0x4a7   :  { %v1851_v12 = vpop.eup %1582  ;;  %1590 = vpow2.f32 %v398_v25 }
 0x4a8   :  { %v1585_v15 = vpop.eup %1584  ;;  %v1461_v16 = vpack.c.bf16 %v1556_v10, %v1555_v11  ;;  %v415_v17 = vsel %vm351_vm3, %v1851_v12, 0.0  ;;  %v44_v10 = vld [vmem:[%s2002_s2 + $0x38] sm:$0xff]  ;;  %v47_v11 = vld [vmem:[%s2002_s2 + $0x50] sm:$0xff] }
 0x4a9   :  { %v409_v18 = vsel %vm351_vm3, %v1585_v15, 0.0 }
 0x4aa   :  { %416 = vadd.xlane.f32.xlu0 %v415_v17  ;;  %410 = vadd.xlane.f32.xlu1 %v409_v18 }
 0x4ab   :  { %1462 = vmatprep.subr.bf16.mxu0 %v1461_v16 }
 0x4ac   :  { %1464 = vmatpush3.bf16.msra.mxu0 %v1461_v16  ;;  %v1587_v27 = vpop.eup %1586  ;;  %v923_v16 = vsub.s32 4, %v1734_v26 }
 0x4ad   :  { %1466 = vmatprep.subr.bf16.mxu0 %v1465_v19  ;;  %v412_v28 = vsel %vm351_vm3, %v1587_v27, 0.0 }
 0x4ae   :  { %v924_v17 = vrot.slane %v1740_v29, %v923_v16  ;;  %v1082_v16 = vld [vmem:[%s2003_s3 + $0x60] sm:$0xff] }
 0x4b0   :  { %1468 = vmatpush3.bf16.msra.mxu0 %v1465_v19  ;;  %v1589_v30 = vpop.eup %1588 }
 0x4bb   :  { %1563 = vrot.lane.b32.xlu1 %v1762_v54, %s1671_s11  ;;  %v418_v54 = vsel %vm351_vm3, %v1589_v30, 0.0 }
 0x4c0   :  { %1568 = vrot.lane.b32.xlu0 %v1771_v61, %s1671_s11  ;;  %v1591_v61 = vpop.eup %1590 }
 0x4c1   :  { %v421_v31 = vsel %vm351_vm3, %v1591_v61, 0.0 }
 0x4df   :  { %413 = vadd.xlane.f32.xlu1 %v412_v28 }
 0x4e3   :  { %419 = vadd.xlane.f32.xlu1 %v418_v54 }
 0x4e7   :  { %422 = vadd.xlane.f32.xlu1 %v421_v31 }
 0x52e   :  { %v405_v33 = vpop.xlane.xlu1 %404 }
 0x52f   :  { %v402_v32 = vpop.xlane.xlu0 %401 }
 0x530   :  { %1592 = vrcp.f32 %v402_v32 }
 0x531   :  { %1594 = vrcp.f32 %v405_v33 }
 0x533   :  { %v408_v34 = vpop.xlane.xlu0 %407 }
 0x534   :  { %1596 = vrcp.f32 %v408_v34 }
 0x537   :  { %v411_v35 = vpop.xlane.xlu1 %410  ;;  %v417_v36 = vpop.xlane.xlu0 %416 }
 0x538   :  { %1598 = vrcp.f32 %v411_v35  ;;  %v42_v35 = vld [vmem:[%s2002_s2 + $0x28] sm:$0xff] }
 0x539   :  { %1600 = vrcp.f32 %v417_v36 }
 0x53a   :  { %v1593_v37 = vpop.eup %1592 }
 0x53b   :  { %v1564_v39 = vpop.permute.xlu1 %1563  ;;  %v1569_v41 = vpop.permute.xlu0 %1568  ;;  %v432_v42 = vmul.f32 %v1593_v37, %v1579_v2  ;;  %v45_v37 = vld [vmem:[%s2002_s2 + $0x40] sm:$0xff] }
 0x53c   :  { %v1566_v43 = vunpack.i.h.bf16 %v1564_v39  ;;  %v1565_v44 = vunpack.i.l.bf16 %v1564_v39  ;;  %v1571_v45 = vunpack.i.h.bf16 %v1569_v41  ;;  %v1570_v46 = vunpack.i.l.bf16 %v1569_v41  ;;  %v1595_v51 = vpop.eup %1594  ;;  %v48_v39 = vld [vmem:[%s2002_s2 + $0x58] sm:$0xff] }
 0x53d   :  { %1351 = vmatprep.mubr.msk.f32.mxu0 %vm351_vm3, %v432_v42  ;;  %v433_v53 = vmul.f32 %v1595_v51, %v1842_v1  ;;  %v1481_v41 = vpack.c.bf16 %v48_v39, %v45_v37  ;;  %v963_v51 = vsub.s32 3, %v1734_v26 }
 0x53e   :  { %v1469_v48 = vpack.c.bf16 %v1566_v43, %v1565_v44  ;;  %v1473_v49 = vpack.c.bf16 %v1571_v45, %v1570_v46  ;;  %v1597_v52 = vpop.eup %1596 }
 0x53f   :  { %v434_v56 = vmul.f32 %v1597_v52, %v1847_v6 }
 0x540   :  { %1470 = vmatprep.subr.bf16.mxu0 %v1469_v48 }
 0x541   :  { %1472 = vmatpush3.bf16.msra.mxu0 %v1469_v48 }
 0x542   :  { %1474 = vmatprep.subr.bf16.mxu0 %v1473_v49  ;;  %v1599_v55 = vpop.eup %1598 }
 0x543   :  { %v435_v57 = vmul.f32 %v1599_v55, %v1585_v15  ;;  %v1601_v62 = vpop.eup %1600 }
 0x544   :  { %v437_v47 = vmul.f32 %v1601_v62, %v1851_v12 }
 0x545   :  { %1476 = vmatpush3.bf16.msra.mxu0 %v1473_v49  ;;  %v957_v49 = vsub.s32 2, %v1734_v26 }
 0x546   :  { %1363 = vmatprep.subr.mxu0 %v41_v4 }
 0x547   :  { %v958_v52 = vrot.slane %v1740_v29, %v957_v49 }
 0x548   :  { %1352 = vmatmul.mubr.msk.f32.vlgmr.msra.gmra.mrb[2].mxu0 %vm351_vm3, %v433_v53 }
 0x549   :  { %1354 = vmatprep.mubr.msk.f32.mxu0 %vm351_vm3, %v434_v56  ;;  %1364 = vmatpush3.msra.mxu0 %v41_v4  ;;  %v964_v56 = vrot.slane %v1740_v29, %v963_v51  ;;  %v1074_v4 = vld [vmem:[%s2003_s3 + $0x20] sm:$0xff] }
 0x54a   :  { %1368 = vmatprep.subr.mxu0 %v38_v5 }
 0x54c   :  { %1355 = vmatmul.mubr.msk.f32.gmra.mrb[4].mxu0 %vm351_vm3, %v435_v57 }
 0x56c   :  { %v414_v58 = vpop.xlane.xlu1 %413 }
 0x56d   :  { %1602 = vrcp.f32 %v414_v58 }
 0x570   :  { %v420_v59 = vpop.xlane.xlu1 %419 }
 0x571   :  { %1604 = vrcp.f32 %v420_v59 }
 0x574   :  { %v423_v60 = vpop.xlane.xlu1 %422 }
 0x575   :  { %1606 = vrcp.f32 %v423_v60 }
 0x577   :  { %v1603_v50 = vpop.eup %1602 }
 0x578   :  { %v436_v63 = vmul.f32 %v1603_v50, %v1587_v27 }
 0x57a   :  { %1357 = vmatprep.mubr.msk.f32.mxu0 %vm351_vm3, %v436_v63  ;;  %v1070_v63 = vld [vmem:[%s2003_s3] sm:$0xff] }
 0x57b   :  { %v1605_v0 = vpop.eup %1604  ;;  %1358 = vmatmul.mubr.msk.f32.gmra.mrb[6].mxu0 %vm351_vm3, %v437_v47  ;;  %v1071_v47 = vld [vmem:[%s2003_s3 + $0x8] sm:$0xff] }
 0x57c   :  { %v438_v1 = vmul.f32 %v1605_v0, %v1589_v30  ;;  %v1485_v0 = vpack.c.bf16 %v1071_v47, %v1070_v63 }
 0x57e   :  { %1360 = vmatprep.mubr.msk.f32.mxu0 %vm351_vm3, %v438_v1  ;;  %1486 = vmatprep.subr.bf16.mxu1 %v1485_v0  ;;  %v1072_v1 = vld [vmem:[%s2003_s3 + $0x10] sm:$0xff] }
 0x57f   :  { %v1607_v2 = vpop.eup %1606  ;;  %1488 = vmatpush3.bf16.msra.mxu1 %v1485_v0 }
 0x580   :  { %v439_v3 = vmul.f32 %v1607_v2, %v1591_v61  ;;  %v1073_v2 = vld [vmem:[%s2003_s3 + $0x18] sm:$0xff] }
 0x582   :  { %1361 = vmatmul.mubr.msk.f32.gmra.mrb[8].mxu0 %vm351_vm3, %v439_v3  ;;  %v1489_v3 = vpack.c.bf16 %v1073_v2, %v1072_v1 }
 0x584   :  { %1490 = vmatprep.subr.bf16.mxu1 %v1489_v3 }
 0x585   :  { %1492 = vmatpush3.bf16.msra.mxu1 %v1489_v3 }
 0x61b   :  { %v1353_v6 = vpop.f32.mrb[2].mxu0 }
 0x61c   :  { %v554_v7 = vpop.f32.mrb[3].mxu0 }
 0x61f   :  { %v1356_v8 = vpop.f32.mrb[4].mxu0 }
 0x620   :  { %v564_v9 = vpop.f32.mrb[5].mxu0 }
 0x621   :  { %1365 = vmatprep.mubr.msk.f32.mxu0 %vm213_vm1, %v564_v9 }
 0x622   :  { %1366 = vmatmul.mubr.msk.f32.vlgmr.msra.gmra.mrb[10].mxu0 %vm213_vm1, %v1356_v8  ;;  %v1077_v8 = vld [vmem:[%s2003_s3 + $0x38] sm:$0xff] }
 0x623   :  { %1370 = vmatprep.mubr.msk.f32.mxu0 %vm213_vm1, %v554_v7  ;;  %1369 = vmatpush3.msra.mxu0 %v38_v5  ;;  %v1075_v5 = vld [vmem:[%s2003_s3 + $0x28] sm:$0xff]  ;;  %v1076_v7 = vld [vmem:[%s2003_s3 + $0x30] sm:$0xff] }
 0x624   :  { %1373 = vmatprep.subr.mxu0 %v44_v10  ;;  %v1497_v9 = vpack.c.bf16 %v1077_v8, %v1076_v7 }
 0x62a   :  { %1371 = vmatmul.mubr.msk.f32.vlgmr.msra.gmra.mrb[10].mxu0 %vm213_vm1, %v1353_v6  ;;  %v1493_v6 = vpack.c.bf16 %v1075_v5, %v1074_v4 }
 0x62b   :  { %1374 = vmatpush3.msra.mxu0 %v44_v10  ;;  %v1078_v10 = vld [vmem:[%s2003_s3 + $0x40] sm:$0xff] }
 0x62c   :  { %1378 = vmatprep.subr.mxu0 %v47_v11  ;;  %1494 = vmatprep.subr.bf16.mxu1 %v1493_v6 }
 0x62d   :  { %1496 = vmatpush3.bf16.msra.mxu1 %v1493_v6 }
 0x62e   :  { %1498 = vmatprep.subr.bf16.mxu1 %v1497_v9 }
 0x631   :  { %1500 = vmatpush3.bf16.msra.mxu1 %v1497_v9 }
 0x64e   :  { %v1359_v12 = vpop.f32.mrb[6].mxu0 }
 0x64f   :  { %v574_v13 = vpop.f32.mrb[7].mxu0 }
 0x650   :  { %1375 = vmatprep.mubr.msk.f32.mxu0 %vm213_vm1, %v574_v13 }
 0x651   :  { %1376 = vmatmul.mubr.msk.f32.vlgmr.msra.gmra.mrb[10].mxu0 %vm213_vm1, %v1359_v12  ;;  %v1080_v12 = vld [vmem:[%s2003_s3 + $0x50] sm:$0xff] }
 0x652   :  { %1379 = vmatpush3.msra.mxu0 %v47_v11  ;;  %v1079_v11 = vld [vmem:[%s2003_s3 + $0x48] sm:$0xff] }
 0x653   :  { %v1501_v13 = vpack.c.bf16 %v1079_v11, %v1078_v10 }
 0x655   :  { %v1362_v14 = vpop.f32.mrb[8].mxu0  ;;  %1502 = vmatprep.subr.bf16.mxu1 %v1501_v13 }
 0x656   :  { %v584_v15 = vpop.f32.mrb[9].mxu0  ;;  %1504 = vmatpush3.bf16.msra.mxu1 %v1501_v13 }
 0x657   :  { %1380 = vmatprep.mubr.msk.f32.mxu0 %vm213_vm1, %v584_v15 }
 0x659   :  { %1381 = vmatmul.mubr.msk.f32.vlgmr.msra.gmra.mrb[10].mxu0 %vm213_vm1, %v1362_v14  ;;  %v1081_v14 = vld [vmem:[%s2003_s3 + $0x58] sm:$0xff] }
 0x65a   :  { %v1505_v15 = vpack.c.bf16 %v1081_v14, %v1080_v12 }
 0x65c   :  { %1506 = vmatprep.subr.bf16.mxu1 %v1505_v15 }
 0x65d   :  { %1508 = vmatpush3.bf16.msra.mxu1 %v1505_v15 }
 0x72c   :  { %v1382_v18 = vpop.f32.mrb[10].mxu0 }
 0x72d   :  { %v910_v19 = vpop.f32.mrb[11].mxu0  ;;  %v926_v20 = vadd.f32 %v1382_v18, %v924_v17 }
 0x72e   :  { %v925_v21 = vadd.f32 %v924_v17, %v910_v19  ;;  %v1083_v17 = vld [vmem:[%s2003_s3 + $0x68] sm:$0xff]  ;;  %v1084_v19 = vld [vmem:[%s2003_s3 + $0x70] sm:$0xff] }
 0x72f   :  { %v928_v24 = vadd.f32 %v926_v20, %v1749_v40  ;;  %v39_v40 = vld [vmem:[%s2002_s2 + $0x10] sm:$0xff]  ;;  %v1509_v18 = vpack.c.bf16 %v1083_v17, %v1082_v16  ;;  %v1085_v20 = vld [vmem:[%s2003_s3 + $0x78] sm:$0xff]  ;;  %s1672_s3 = smov [#allocation5]  }
 0x730   :  { %v927_v22 = vadd.f32 %v925_v21, %v1745_v38  ;;  %v1477_v36 = vpack.c.bf16 %v42_v35, %v39_v40  ;;  %v1513_v21 = vpack.c.bf16 %v1085_v20, %v1084_v19  ;;  %s1174_s0 = sshll.u32 %s1672_s3, 4  ;;  %s1175_s0 = int_to_ptr.vmem [resolvable:$true] %s1174_s0 }
 0x731   :  { %v932_v25 = vsel %vm50_vm0, %v928_v24, 0.0  ;;  %1510 = vmatprep.subr.bf16.mxu1 %v1509_v18  ;;  %s1638_s7 = scalar_lea.vmem %s1175_s0, 256  ;;  %p1643_p9 = scmp.lt.s32.totalorder %s1175_s0, %s1175_s0 }
 0x732   :  { %v929_v23 = vsel %vm50_vm0, %v927_v22, 0.0  ;;  %1478 = vmatprep.subr.bf16.mxu0 %v1477_v36  ;;  %1512 = vmatpush3.bf16.msra.mxu1 %v1509_v18  ;;  %p1639_p8 = scmp.ne.s32.totalorder %s1175_s0, %s1638_s7  ;;  %p1644_p10 = scmp.lt.s32.totalorder %s1638_s7, %s1638_s7 }
 0x733   :  { %930 = vadd.xlane.f32.xlu1 %v929_v23  ;;  %1480 = vmatpush3.bf16.msra.mxu0 %v1477_v36 }
 0x734   :  { %1482 = vmatprep.subr.bf16.mxu0 %v1481_v41  ;;  %1514 = vmatprep.subr.bf16.mxu1 %v1513_v21  ;;  %p1645_p11 = por %p1644_p10, %p1643_p9 }
 0x736   :  { %1516 = vmatpush3.bf16.msra.mxu1 %v1513_v21  ;;  %p1646_p12 = pnand %p1645_p11, %p1639_p8 }
 0x737   :  { %933 = vadd.xlane.f32.xlu1 %v932_v25  ;;  %1484 = vmatpush3.bf16.msra.mxu0 %v1481_v41 }
 0x7c0   :  { %v931_v27 = vpop.xlane.xlu1 %930 }
 0x7c1   :  { %v935_v28 = vmul.f32 0.03125, %v931_v27 }
 0x7c3   :  { %v937_v30 = vsub.f32 %v927_v22, %v935_v28  ;;  %v969_v22 = vsub.s32 7, %v1734_v26 }
 0x7c4   :  { %v934_v54 = vpop.xlane.xlu1 %933 }
 0x7c5   :  { %v936_v61 = vmul.f32 0.03125, %v934_v54  ;;  %v939_v31 = vmul.f32 %v937_v30, %v937_v30  ;;  %v970_v23 = vrot.slane %v1740_v29, %v969_v22 }
 0x7c7   :  { %v938_v32 = vsub.f32 %v928_v24, %v936_v61  ;;  %v941_v33 = vsel %vm50_vm0, %v939_v31, 0.0 }
 0x7c8   :  { %942 = vadd.xlane.f32.xlu1 %v941_v33 }
 0x7c9   :  { %v940_v34 = vmul.f32 %v938_v32, %v938_v32 }
 0x7cb   :  { %v944_v38 = vsel %vm50_vm0, %v940_v34, 0.0 }
 0x7cc   :  { %945 = vadd.xlane.f32.xlu0 %v944_v38 }
 0x855   :  { %v943_v42 = vpop.xlane.xlu1 %942 }
 0x856   :  { %v947_v43 = vmul.f32 0.03125, %v943_v42 }
 0x858   :  { %v949_v44 = vadd.f32 1e-05, %v947_v43 }
 0x859   :  { %v946_v45 = vpop.xlane.xlu0 %945 }
 0x85a   :  { %1608 = vrsqrt.f32 %v949_v44  ;;  %v948_v46 = vmul.f32 0.03125, %v946_v45 }
 0x85c   :  { %v950_v48 = vadd.f32 1e-05, %v948_v46  ;;  %v1088_v46 = vsub.s32 5, %v1734_v26 }
 0x85e   :  { %1610 = vrsqrt.f32 %v950_v48  ;;  %v1089_v48 = vrot.slane %v1740_v29, %v1088_v46 }
 0x864   :  { %v1609_v53 = vpop.eup %1608 }
 0x865   :  { %v953_v55 = vmul.f32 %v1609_v53, %v937_v30 }
 0x867   :  { %v959_v57 = vmul.f32 %v958_v52, %v953_v55 }
 0x868   :  { %v1611_v58 = vpop.eup %1610 }
 0x869   :  { %v954_v59 = vmul.f32 %v1611_v58, %v938_v32  ;;  %v1921_v60 = vadd.f32 %v964_v56, %v959_v57 }
 0x86b   :  { %v960_v62 = vmul.f32 %v958_v52, %v954_v59  ;;  %1391 = vmatprep.mubr.msk.f32.mxu0 %vm50_vm0, %v1921_v60 }
 0x86d   :  { %v1925_v50 = vadd.f32 %v964_v56, %v960_v62 }
 0x86f   :  { %1392 = vmatmul.mubr.msk.f32.vlgmr.msra.gmra.mrb[12].mxu0 %vm50_vm0, %v1925_v50 }
 0x942   :  { %v1393_v24 = vpop.f32.mrb[12].mxu0 }
 0x943   :  { %v1049_v25 = vadd.f32 %v1393_v24, %v970_v23  ;;  %v1043_v27 = vpop.f32.mrb[13].mxu0 }
 0x944   :  { %v1044_v28 = vadd.f32 %v1043_v27, %v970_v23 }
 0x945   :  { %v1053_v30 = vmul.f32 0.044715, %v1049_v25 }
 0x946   :  { %v1052_v54 = vmul.f32 0.044715, %v1044_v28 }
 0x947   :  { %v1055_v61 = vmul.f32 %v1053_v30, %v1049_v25 }
 0x948   :  { %v1054_v31 = vmul.f32 %v1052_v54, %v1044_v28 }
 0x949   :  { %v1057_v32 = vmul.f32 %v1055_v61, %v1049_v25 }
 0x94a   :  { %v1056_v33 = vmul.f32 %v1054_v31, %v1044_v28 }
 0x94b   :  { %v1059_v34 = vadd.f32 %v1057_v32, %v1049_v25 }
 0x94c   :  { %v1058_v38 = vadd.f32 %v1056_v33, %v1044_v28 }
 0x94d   :  { %v1061_v40 = vmul.f32 0.7978846, %v1059_v34 }
 0x94e   :  { %v1060_v35 = vmul.f32 0.7978846, %v1058_v38 }
 0x94f   :  { %1612 = vtanh.f32 %v1061_v40 }
 0x950   :  { %1614 = vtanh.f32 %v1060_v35 }
 0x959   :  { %v1613_v36 = vpop.eup %1612 }
 0x95a   :  { %v1615_v37 = vpop.eup %1614  ;;  %v1065_v39 = vadd.f32 1.0, %v1613_v36 }
 0x95b   :  { %v1064_v41 = vadd.f32 1.0, %v1615_v37 }
 0x95c   :  { %v1067_v42 = vmul.f32 0.5, %v1065_v39 }
 0x95d   :  { %v1066_v43 = vmul.f32 0.5, %v1064_v41 }
 0x95e   :  { %v1069_v45 = vmul.f32 %v1067_v42, %v1049_v25 }
 0x95f   :  { %v1068_v44 = vmul.f32 %v1066_v43, %v1044_v28 }
 0x961   :  { %1426 = vmatprep.mubr.f32.mxu1 %v1068_v44 }
 0x962   :  { %1427 = vmatmul.mubr.f32.vlgmr.msra.gmra.mrb[8].mxu1 %v1069_v45 }
 0xa35   :  { %v1428_v49 = vpop.f32.mrb[8].mxu1 }
 0xa36   :  { %v1162_v51 = vadd.f32 %v1428_v49, %v1089_v48  ;;  %v1156_v52 = vpop.f32.mrb[9].mxu1 }
 0xa37   :  { %v1157_v53 = vadd.f32 %v1156_v52, %v1089_v48 }
 0xa38   :  { %v1166_v55 = vadd.f32 %v1162_v51, %v1925_v50 }
 0xa39   :  { %v1165_v56 = vadd.f32 %v1157_v53, %v1921_v60 }
 0xa3a   :  { %1168 = vst.msk [vmem:[#allocation5 + $0x8] sm:$0xff] %vm50_vm0, %v1166_v55 }
 0xa3b   :  { %1167 = vst.msk [vmem:[#allocation5] sm:$0xff] %vm50_vm0, %v1165_v56 }
 0xa3c   :  { %1649 = shalt.err (!%p1646_p12)
}
 0xa3d   :  { %s1650_s10 = scalar_lea.hbm %s2005_s5, 256 }
 0xa3e   :  { %p1651_p13 = scmp.ne.s32.totalorder %s2005_s5, %s1650_s10  ;;  %p1654_p0 = scmp.lt.u32.totalorder %s1650_s10, %s2005_s5 }
 0xa40   :  { %p1656_p1 = pnand %p1654_p0, %p1651_p13 }
 0xa42   :  { %1659 = shalt.err (!%p1656_p1)
}
 0xa43   :  { %1180 = dma.vmem_to_hbm [thread:$0]  %s1175_s0, 256, %s2005_s5, [#allocation4], %s1665_s28, %s1665_s28, %s1666_s29  }
 0xa44   :  { %1662 = dma.done.wait [#allocation4], 256  }
 0xa45   :  { %1663 = vsyncadd [#allocation4], 4294967040 }
 0xa46   :  { %1184 = vsyncpa [#allocation3], 1 }
 0xa47   :  { %1185 = vsyncpa [#allocation4], 1 }

</bundles_post_ra>
